<compile_context>
chip_gen: v6e
topology: v6e:2x2x1
jax: 0.10.0
libtpu: 0.0.40
codegen_flags: <defaults>
</compile_context>

<pallas_src>
import numpy as np
import jax
import jax.numpy as jnp
from jax.experimental import pallas as pl
from jax.experimental.pallas import tpu as pltpu

BN_EPS = 1e-5  # nn.BatchNorm1d default eps

# Row layout of the f32 vector slab.
V_BGL, V_SCALE, V_SHIFT, V_B1, V_B2, V_PW = 0, 1, 2, 3, 4, 8


def _round_up(v, m):
    return ((v + m - 1) // m) * m


# ----------------------------------------------------------------------------
# Pallas kernel: whole batch, all periods, one invocation (grid=()).
# ----------------------------------------------------------------------------
def make_kernel(B, T, N, D, Fp, Hdp, Op, o_w1, o_w2):
    two_d = 2 * D

    def kernel(x_ref,      # (B*T*N, Fp)   bf16, rows ordered (b, t, n)
               adj_ref,    # (B*T, N, N)   bf16, shared normalized adjacency
               wslab_ref,  # (Wrows, 128)  bf16: Wgl | W1 | W2
               vslab_ref,  # (Vrows, 128)  f32 : bgl, bn scale/shift, b1, b2, probs
               out_ref):   # (B*N, Op)     f32, lane-dense
        # (1) Fused input transform: X @ (Wg @ blockdiag(Wlz, Wlh)).
        wgl = wslab_ref[0:Fp, 0:two_d]                              # (Fp, 2D) bf16
        xw = jnp.dot(x_ref[...], wgl,
                     preferred_element_type=jnp.float32)            # (B*T*N, 2D) f32
        xw3 = xw.reshape(B * T, N, two_d).astype(jnp.bfloat16)      # leading split only

        # (2) Graph conv for every (b, t) block at once (batched MXU matmul).
        #     TODO(synk): for large N / B*T, replace the replicated adjacency by a
        #     grid axis over (b, t) with the shared (N, N) adj resident in VMEM
        #     (dimension_semantics=("parallel",) also enables the 2nd TC on v7x).
        conv = jnp.einsum('gmn,gnd->gmd', adj_ref[...], xw3,
                          preferred_element_type=jnp.float32)        # (B*T, N, 2D) f32
        bgl = vslab_ref[V_BGL:V_BGL + 1, 0:two_d]                    # (1, 2D)
        g = conv + bgl

        # (3) TGCN2 gates with zero hidden state (A3TGCN2 passes H=None each period),
        #     so the reset gate and the hidden halves of linear_z/linear_h drop out.
        z = jax.nn.sigmoid(g[..., :D])
        h_tilde = jnp.tanh(g[..., D:])
        contrib = (1.0 - z) * h_tilde                                # (B*T, N, D) f32

        # (4) Attention-weighted sum over periods (probs pre-broadcast on host).
        pw = vslab_ref[V_PW:V_PW + T * N, 0:D].reshape(T, N, D)      # f32
        h = jnp.sum(contrib.reshape(B, T, N, D) * pw, axis=1)        # (B, N, D)
        h = h.reshape(B * N, D)

        # (5) BatchNorm1d (eval running stats, folded to scale/shift) + sigmoid.
        #     TODO(synk): only the use_layer_norm=False (BatchNorm1d) path is done.
        #     TODO(synk): nn.Dropout is identity (eval semantics).
        scale = vslab_ref[V_SCALE:V_SCALE + 1, 0:D]
        shift = vslab_ref[V_SHIFT:V_SHIFT + 1, 0:D]
        ha = jax.nn.sigmoid(h * scale + shift)

        # (6) MLP head (Linear -> ReLU -> Linear) + final sigmoid, 128-lane padded
        #     so the single output store is unmasked / lane-dense.
        w1 = wslab_ref[o_w1:o_w1 + D, 0:Hdp]                         # (D, Hdp) bf16
        b1 = vslab_ref[V_B1:V_B1 + 1, 0:Hdp]
        h1 = jnp.maximum(
            jnp.dot(ha.astype(jnp.bfloat16), w1,
                    preferred_element_type=jnp.float32) + b1, 0.0)
        w2 = wslab_ref[o_w2:o_w2 + Hdp, 0:Op]                        # (Hdp, Op) bf16
        b2 = vslab_ref[V_B2:V_B2 + 1, 0:Op]
        out_ref[...] = jax.nn.sigmoid(
            jnp.dot(h1.astype(jnp.bfloat16), w2,
                    preferred_element_type=jnp.float32) + b2)

    return kernel


# ----------------------------------------------------------------------------
# Host-side glue (index plumbing + parameter folding/packing, not the hot path).
# ----------------------------------------------------------------------------
def unbatch_edge_index_np(edge_index, batch):
    # Mirrors Predictor.unbatch_edge_index (keep edges of the first graph only).
    counts = np.bincount(batch)
    cum = np.concatenate([[0], np.cumsum(counts)])
    mask = (edge_index[0] >= cum[0]) & (edge_index[0] < cum[1])
    sub = edge_index[:, mask].copy()
    sub[0] -= cum[0]
    sub[1] -= cum[0]
    return sub


def gcn_norm_dense_np(edge_index, num_nodes):
    # Dense D^{-1/2} (A + I) D^{-1/2}, matching GCNConv(add_self_loops=True).
    A = np.zeros((num_nodes, num_nodes), np.float32)
    src, dst = edge_index
    A[dst, src] = 1.0
    A += np.eye(num_nodes, dtype=np.float32)
    deg = A.sum(axis=1)
    dinv = 1.0 / np.sqrt(np.maximum(deg, 1e-12))
    return (dinv[:, None] * A) * dinv[None, :]


def pack_params(p):
    """Fold gate linears + BN into the weights, pad, and prepare slab pieces."""
    F, D = p["wz"].shape
    Hd = p["w1"].shape[1]
    O = p["w2"].shape[1]
    Fp = _round_up(F, 8)
    Hdp = _round_up(Hd, 128)
    Op = _round_up(O, 128)

    # Fold gate linears (exact: (A . M) . W = A . (M . W), bias after aggregation).
    wgl = jnp.concatenate([p["wz"] @ p["wlz"], p["wh"] @ p["wlh"]], axis=1)   # (F, 2D)
    wglp = jnp.zeros((Fp, 2 * D), jnp.float32).at[:F, :].set(wgl)
    bgl = jnp.concatenate([p["bz"] @ p["wlz"] + p["blz"],
                           p["bh"] @ p["wlh"] + p["blh"]], axis=1)            # (1, 2D)

    # Fold eval-mode BatchNorm1d into scale/shift.
    scale = p["gamma"] * jax.lax.rsqrt(p["rvar"] + BN_EPS)
    shift = p["beta"] - p["rmean"] * scale

    # MLP head padded to lane-dense widths (padded lanes stay exactly zero).
    w1p = jnp.zeros((D, Hdp), jnp.float32).at[:, :Hd].set(p["w1"])
    b1p = jnp.zeros((1, Hdp), jnp.float32).at[:, :Hd].set(p["b1"])
    w2p = jnp.zeros((Hdp, Op), jnp.float32).at[:Hd, :O].set(p["w2"])
    b2p = jnp.zeros((1, Op), jnp.float32).at[:, :O].set(p["b2"])

    probs = jax.nn.softmax(p["attention"])

    return dict(wglp=wglp, bgl=bgl, bn_scale=scale, bn_shift=shift,
                w1p=w1p, b1p=b1p, w2p=w2p, b2p=b2p, probs=probs)


def init_params(key, *, features, linear_dim, periods_in, periods_out, num_channels):
    D = linear_dim
    O = len(periods_out) * num_channels
    Hd = (D + O) // 2
    ks = jax.random.split(key, 16)

    def w(k, shape, scale=0.1):
        return (scale * jax.random.normal(k, shape)).astype(jnp.float32)

    # torch linear_z / linear_h weights are (D, 2D); with H == 0 only the columns
    # acting on the graph-conv half matter (the hidden half multiplies zeros).
    wlz_full = w(ks[4], (2 * D, D))   # == linear_z.weight.T
    wlh_full = w(ks[5], (2 * D, D))   # == linear_h.weight.T

    return dict(
        attention=w(ks[0], (periods_in,), 1.0),
        wz=w(ks[1], (features, D)), bz=w(ks[2], (1, D)),
        wh=w(ks[3], (features, D)), bh=w(ks[6], (1, D)),
        wlz=wlz_full[:D, :], blz=w(ks[7], (1, D)),
        wlh=wlh_full[:D, :], blh=w(ks[8], (1, D)),
        gamma=jnp.ones((1, D), jnp.float32),   # BatchNorm1d default init
        beta=jnp.zeros((1, D), jnp.float32),
        rmean=jnp.zeros((1, D), jnp.float32),
        rvar=jnp.ones((1, D), jnp.float32),
        w1=w(ks[9], (D, Hd)), b1=w(ks[10], (1, Hd)),
        w2=w(ks[11], (Hd, O)), b2=w(ks[12], (1, O)),
    )


def predictor_forward(x, edge_index_np, batch_np, params, *,
                      batch_size, num_channels, periods_out):
    T, total_nodes, F = x.shape
    B = batch_size
    N = total_nodes // B
    D = params["wz"].shape[1]
    O = len(periods_out) * num_channels

    pk = pack_params(params)
    Fp = pk["wglp"].shape[0]
    Hdp = pk["w1p"].shape[1]
    Op = pk["w2p"].shape[1]

    # Activations: rows (b, t, n), lanes f (zero-padded to Fp), bf16.
    x_btnf = jnp.transpose(x.reshape(T, B, N, F), (1, 0, 2, 3)).reshape(B * T * N, F)
    x2 = jnp.zeros((B * T * N, Fp), jnp.bfloat16).at[:, :F].set(
        x_btnf.astype(jnp.bfloat16))

    # Shared normalized adjacency of graph 0 (mirrors unbatch_edge_index + GCNConv),
    # replicated per (b, t) block -- linear in B*T, not quadratic like the old kron.
    ei = unbatch_edge_index_np(edge_index_np, batch_np)
    adj = jnp.asarray(gcn_norm_dense_np(ei, N), jnp.float32)
    adj_b = jnp.broadcast_to(adj, (B * T, N, N)).astype(jnp.bfloat16)

    # bf16 weight slab: Wgl | W1 | W2, 16-row-aligned offsets, 128 lanes.
    lanes = max(128, 2 * D, Hdp, Op)
    o_w1 = _round_up(Fp, 16)
    o_w2 = _round_up(o_w1 + D, 16)
    wrows = _round_up(o_w2 + Hdp, 16)
    wslab = jnp.zeros((wrows, lanes), jnp.bfloat16)
    wslab = wslab.at[0:Fp, 0:2 * D].set(pk["wglp"].astype(jnp.bfloat16))
    wslab = wslab.at[o_w1:o_w1 + D, 0:Hdp].set(pk["w1p"].astype(jnp.bfloat16))
    wslab = wslab.at[o_w2:o_w2 + Hdp, 0:Op].set(pk["w2p"].astype(jnp.bfloat16))

    # f32 vector slab: fused biases, BN scale/shift, MLP biases, attention probs.
    vrows = _round_up(V_PW + T * N, 8)
    vslab = jnp.zeros((vrows, lanes), jnp.float32)
    vslab = vslab.at[V_BGL, 0:2 * D].set(pk["bgl"][0])
    vslab = vslab.at[V_SCALE, 0:D].set(pk["bn_scale"][0])
    vslab = vslab.at[V_SHIFT, 0:D].set(pk["bn_shift"][0])
    vslab = vslab.at[V_B1, 0:Hdp].set(pk["b1p"][0])
    vslab = vslab.at[V_B2, 0:Op].set(pk["b2p"][0])
    pw = jnp.broadcast_to(pk["probs"][:, None, None], (T, N, D)).reshape(T * N, D)
    vslab = vslab.at[V_PW:V_PW + T * N, 0:D].set(pw)

    kernel = make_kernel(B, T, N, D, Fp, Hdp, Op, o_w1, o_w2)
    vmem = pl.BlockSpec(memory_space=pltpu.MemorySpace.VMEM)
    out = pl.pallas_call(
        kernel,
        out_shape=jax.ShapeDtypeStruct((B * N, Op), jnp.float32),
        in_specs=[vmem] * 4,
        out_specs=vmem,
    )(x2, adj_b, wslab, vslab)

    # sigmoid commutes with reshape; padded lanes (value 0.5) are sliced off here.
    return out[:, :O].reshape(-1, num_channels, len(periods_out))


# ----------------------------------------------------------------------------
if __name__ == "__main__":
    B, N, F, T = 2, 8, 4, 8            # batch, nodes/graph, features, periods_in
    D = 32                             # linear_dim
    periods_out = [1, 2, 3]
    C = 4                              # num_channels

    key = jax.random.PRNGKey(0)
    kx, kp = jax.random.split(key)

    # node features: (seq_len, num_nodes*batch_size, features)
    x = jax.random.normal(kx, (T, B * N, F), jnp.float32)

    # batched directed ring graph with global node ids + PyG-style batch vector
    src = np.concatenate([g * N + np.arange(N) for g in range(B)])
    dst = np.concatenate([g * N + (np.arange(N) + 1) % N for g in range(B)])
    edge_index = np.stack([src, dst]).astype(np.int64)      # (2, B*num_edges)
    batch = np.repeat(np.arange(B), N)                        # node -> graph id

    params = init_params(kp, features=F, linear_dim=D, periods_in=T,
                         periods_out=periods_out, num_channels=C)

    out = predictor_forward(x, edge_index, batch, params,
                            batch_size=B, num_channels=C,
                            periods_out=periods_out)
    out = jax.block_until_ready(out)
    assert out.shape == (B * N, C, len(periods_out)), out.shape
    assert bool(jnp.all(jnp.isfinite(out)))
    print("KERNEL_OK")
</pallas_src>

<mosaic_0001>
module attributes {stable_mosaic.version = 11 : i64} {
  func.func @kernel(%arg0: memref<128x8xbf16, #tpu.memory_space<vmem>>, %arg1: memref<16x8x8xbf16, #tpu.memory_space<vmem>>, %arg2: memref<176x128xbf16, #tpu.memory_space<vmem>>, %arg3: memref<72x128xf32, #tpu.memory_space<vmem>>, %arg4: memref<16x128xf32, #tpu.memory_space<vmem>>) attributes {dimension_semantics = [], scalar_prefetch = 0 : i64, scratch_operands = 0 : i64, tpu.core_type = #tpu.core_type<tc>} {
    %c0 = arith.constant 0 : index
    %c0_0 = arith.constant 0 : index
    %0 = vector.load %arg2[%c0, %c0_0] : memref<176x128xbf16, #tpu.memory_space<vmem>>, vector<8x64xbf16>
    %c0_1 = arith.constant 0 : index
    %c0_2 = arith.constant 0 : index
    %1 = vector.load %arg0[%c0_1, %c0_2] : memref<128x8xbf16, #tpu.memory_space<vmem>>, vector<128x8xbf16>
    %cst = arith.constant dense<0.000000e+00> : vector<128x64xf32>
    %2 = tpu.matmul %1, %0, %cst {dimension_numbers = #tpu.dot_dimension_numbers<[1], [0], [0], [1], [0, 0, 1, 1], [], []>} : vector<128x8xbf16>, vector<8x64xbf16>, vector<128x64xf32> -> vector<128x64xf32>
    %3 = vector.shape_cast %2 : vector<128x64xf32> to vector<16x8x64xf32>
    %4 = arith.truncf %3 : vector<16x8x64xf32> to vector<16x8x64xbf16>
    %c0_3 = arith.constant 0 : index
    %c0_4 = arith.constant 0 : index
    %c0_5 = arith.constant 0 : index
    %5 = vector.load %arg1[%c0_3, %c0_4, %c0_5] : memref<16x8x8xbf16, #tpu.memory_space<vmem>>, vector<16x8x8xbf16>
    "tpu.trace_start"() <{level = 10 : i32, message = "gmn,gnd->gmd"}> : () -> ()
    %cst_6 = arith.constant dense<0.000000e+00> : vector<16x8x64xf32>
    %6 = tpu.matmul %5, %4, %cst_6 {dimension_numbers = #tpu.dot_dimension_numbers<[2], [1], [1], [2], [0, 0, 0, 1, 1, 2], [0], [0]>} : vector<16x8x8xbf16>, vector<16x8x64xbf16>, vector<16x8x64xf32> -> vector<16x8x64xf32>
    "tpu.trace_stop"() : () -> ()
    %c0_7 = arith.constant 0 : index
    %c0_8 = arith.constant 0 : index
    %7 = vector.load %arg3[%c0_7, %c0_8] : memref<72x128xf32, #tpu.memory_space<vmem>>, vector<1x64xf32>
    %8 = vector.shape_cast %7 : vector<1x64xf32> to vector<1x1x64xf32>
    %9 = vector.broadcast %8 : vector<1x1x64xf32> to vector<16x8x64xf32>
    %10 = arith.addf %6, %9 : vector<16x8x64xf32>
    %11 = vector.extract_strided_slice %10 {offsets = [0, 0, 0], sizes = [16, 8, 32], strides = [1, 1, 1]} : vector<16x8x64xf32> to vector<16x8x32xf32>
    %12 = arith.negf %11 : vector<16x8x32xf32>
    %13 = math.exp %12 : vector<16x8x32xf32>
    %cst_9 = arith.constant 1.000000e+00 : f32
    %14 = vector.broadcast %cst_9 : f32 to vector<16x8x32xf32>
    %15 = arith.addf %14, %13 : vector<16x8x32xf32>
    %16 = arith.divf %14, %15 : vector<16x8x32xf32>
    %17 = vector.extract_strided_slice %10 {offsets = [0, 0, 32], sizes = [16, 8, 32], strides = [1, 1, 1]} : vector<16x8x64xf32> to vector<16x8x32xf32>
    %18 = math.tanh %17 : vector<16x8x32xf32>
    %cst_10 = arith.constant 1.000000e+00 : f32
    %19 = vector.broadcast %cst_10 : f32 to vector<16x8x32xf32>
    %20 = arith.subf %19, %16 : vector<16x8x32xf32>
    %21 = arith.mulf %20, %18 : vector<16x8x32xf32>
    %c8 = arith.constant 8 : index
    %c0_11 = arith.constant 0 : index
    %22 = vector.load %arg3[%c8, %c0_11] : memref<72x128xf32, #tpu.memory_space<vmem>>, vector<64x32xf32>
    %23 = vector.shape_cast %22 : vector<64x32xf32> to vector<8x8x32xf32>
    %24 = vector.shape_cast %21 : vector<16x8x32xf32> to vector<2x8x8x32xf32>
    %25 = vector.shape_cast %23 : vector<8x8x32xf32> to vector<1x8x8x32xf32>
    %26 = vector.broadcast %25 : vector<1x8x8x32xf32> to vector<2x8x8x32xf32>
    %27 = arith.mulf %24, %26 : vector<2x8x8x32xf32>
    %cst_12 = arith.constant dense<0.000000e+00> : vector<2x8x32xf32>
    %28 = vector.multi_reduction <add>, %27, %cst_12 [1] : vector<2x8x8x32xf32> to vector<2x8x32xf32>
    %29 = vector.shape_cast %28 : vector<2x8x32xf32> to vector<16x32xf32>
    %c1 = arith.constant 1 : index
    %c0_13 = arith.constant 0 : index
    %30 = vector.load %arg3[%c1, %c0_13] : memref<72x128xf32, #tpu.memory_space<vmem>>, vector<1x32xf32>
    %c2 = arith.constant 2 : index
    %c0_14 = arith.constant 0 : index
    %31 = vector.load %arg3[%c2, %c0_14] : memref<72x128xf32, #tpu.memory_space<vmem>>, vector<1x32xf32>
    %32 = vector.broadcast %30 : vector<1x32xf32> to vector<16x32xf32>
    %33 = arith.mulf %29, %32 : vector<16x32xf32>
    %34 = vector.broadcast %31 : vector<1x32xf32> to vector<16x32xf32>
    %35 = arith.addf %33, %34 : vector<16x32xf32>
    %36 = arith.negf %35 : vector<16x32xf32>
    %37 = math.exp %36 : vector<16x32xf32>
    %cst_15 = arith.constant 1.000000e+00 : f32
    %38 = vector.broadcast %cst_15 : f32 to vector<16x32xf32>
    %39 = arith.addf %38, %37 : vector<16x32xf32>
    %40 = arith.divf %38, %39 : vector<16x32xf32>
    %c16 = arith.constant 16 : index
    %c0_16 = arith.constant 0 : index
    %41 = vector.load %arg2[%c16, %c0_16] : memref<176x128xbf16, #tpu.memory_space<vmem>>, vector<32x128xbf16>
    %c3 = arith.constant 3 : index
    %c0_17 = arith.constant 0 : index
    %42 = vector.load %arg3[%c3, %c0_17] : memref<72x128xf32, #tpu.memory_space<vmem>>, vector<1x128xf32>
    %43 = arith.truncf %40 : vector<16x32xf32> to vector<16x32xbf16>
    %cst_18 = arith.constant dense<0.000000e+00> : vector<16x128xf32>
    %44 = tpu.matmul %43, %41, %cst_18 {dimension_numbers = #tpu.dot_dimension_numbers<[1], [0], [0], [1], [0, 0, 1, 1], [], []>} : vector<16x32xbf16>, vector<32x128xbf16>, vector<16x128xf32> -> vector<16x128xf32>
    %45 = vector.broadcast %42 : vector<1x128xf32> to vector<16x128xf32>
    %46 = arith.addf %44, %45 : vector<16x128xf32>
    %cst_19 = arith.constant 0.000000e+00 : f32
    %47 = vector.broadcast %cst_19 : f32 to vector<16x128xf32>
    %48 = arith.maximumf %46, %47 : vector<16x128xf32>
    %c48 = arith.constant 48 : index
    %c0_20 = arith.constant 0 : index
    %49 = vector.load %arg2[%c48, %c0_20] : memref<176x128xbf16, #tpu.memory_space<vmem>>, vector<128x128xbf16>
    %c4 = arith.constant 4 : index
    %c0_21 = arith.constant 0 : index
    %50 = vector.load %arg3[%c4, %c0_21] : memref<72x128xf32, #tpu.memory_space<vmem>>, vector<1x128xf32>
    %51 = arith.truncf %48 : vector<16x128xf32> to vector<16x128xbf16>
    %cst_22 = arith.constant dense<0.000000e+00> : vector<16x128xf32>
    %52 = tpu.matmul %51, %49, %cst_22 {dimension_numbers = #tpu.dot_dimension_numbers<[1], [0], [0], [1], [0, 0, 1, 1], [], []>} : vector<16x128xbf16>, vector<128x128xbf16>, vector<16x128xf32> -> vector<16x128xf32>
    %53 = vector.broadcast %50 : vector<1x128xf32> to vector<16x128xf32>
    %54 = arith.addf %52, %53 : vector<16x128xf32>
    %55 = arith.negf %54 : vector<16x128xf32>
    %56 = math.exp %55 : vector<16x128xf32>
    %cst_23 = arith.constant 1.000000e+00 : f32
    %57 = vector.broadcast %cst_23 : f32 to vector<16x128xf32>
    %58 = arith.addf %57, %56 : vector<16x128xf32>
    %59 = arith.divf %57, %58 : vector<16x128xf32>
    %c0_24 = arith.constant 0 : index
    %c0_25 = arith.constant 0 : index
    %60 = vector.load %arg4[%c0_24, %c0_25] : memref<16x128xf32, #tpu.memory_space<vmem>>, vector<16x128xf32>
    tpu.vector_store %arg4[%c0_24, %c0_25], %59 {strides = array<i32>} : memref<16x128xf32, #tpu.memory_space<vmem>>, vector<16x128xf32>,
    return
  }
}

</mosaic_0001>

<bundles_post_ra>
// kernel: tpu_custom_call.1
= control target key start
LH: loop header
LB: loop body
LE: loop exit
PB: predicated region body
PF: predicated region fallthrough
CT: control target
= control target key end

     0   :  { %vm101_vm0 = vcmask 1043456   ;;  %vm76_vm1 = vcmask 64512   ;;  %s2324_s0 = inlined_call_operand.vmem [shape: bf16[128,8], index: 0, kind: input, shape index: {}]   ;;  %s2325_s1 = inlined_call_operand.vmem [shape: bf16[16,8,8], index: 1, kind: input, shape index: {}]   ;;  %s2326_s2 = inlined_call_operand.vmem [shape: bf16[176,128], index: 2, kind: input, shape index: {}]   ;;  %s2327_s3 = inlined_call_operand.vmem [shape: f32[72,128], index: 3, kind: input, shape index: {}]   ;;  %s2328_s4 = inlined_call_operand.hbm [shape: f32[16,128], index: 4, kind: output, shape index: {}]  }
   0x1   :  { %v19_v0 = vld [vmem:[%s2326_s2] sm:$0xf]  ;;  %v1744_v3 = vld [vmem:[%s2324_s0 + $0x8] sm:$0xff]   ;;  %v1745_v4 = vld [vmem:[%s2324_s0 + $0x10] sm:$0xff]  }
   0x2   :  { %v1743_v1 = vld [vmem:[%s2324_s0] sm:$0xff]   ;;  %1736 = vmatprep.subr.msk.bf16.mxu0 %vm101_vm0, %v19_v0  ;;  %v103_v2 = vsel %vm101_vm0, %v19_v0, 0  ;;  %v1746_v5 = vld [vmem:[%s2324_s0 + $0x18] sm:$0xff]  }
   0x3   :  { %1595 = vmatpush3.bf16.msra.mxu0 %v103_v2  ;;  %1596 = vmatprep.mubr.msk.bf16.mxu0 %vm76_vm1, %v1743_v1  ;;  %v1747_v6 = vld [vmem:[%s2324_s0 + $0x20] sm:$0xff]  }
   0x6   :  { %1597 = vmatmul.mubr.msk.bf16.vlgmr.msra.gmra.mxu0 %vm76_vm1, %v1744_v3 }
   0x7   :  { %1600 = vmatprep.mubr.msk.bf16.mxu0 %vm76_vm1, %v1745_v4 }
   0xe   :  { %1601 = vmatmul.mubr.msk.bf16.gmra.mxu0 %vm76_vm1, %v1746_v5 }
   0xf   :  { %1604 = vmatprep.mubr.msk.bf16.mxu0 %vm76_vm1, %v1747_v6 }
  0x10   :  { %9 = vsyncpa [#allocation3], 0  ;;  %v1748_v7 = vld [vmem:[%s2324_s0 + $0x28] sm:$0xff]   ;;  %v1749_v8 = vld [vmem:[%s2324_s0 + $0x30] sm:$0xff]   ;;  %v1895_v10 = vmov 0.0   ;;  %vm1896_vm2 = vmmov 0  }
  0x11   :  { %v1750_v9 = vld [vmem:[%s2324_s0 + $0x38] sm:$0xff]   ;;  %1612 = vmatprep.subr.bf16.mxu0 %v1895_v10  ;;  %1618 = vmatprep.subr.bf16.mxu1 %v1895_v10  ;;  %v218_v17 = vld [vmem:[%s2325_s1] sm:$0xf]  ;;  %v219_v23 = vld [vmem:[%s2325_s1 + $0x4] sm:$0xf]  ;;  %vm1207_vm3 = vcmask 261120  }
  0x12   :  { %1620 = vmatprep.mubr.msk.bf16.mxu1 %vm1896_vm2, %v1895_v10  ;;  %v222_v29 = vld [vmem:[%s2325_s1 + $0x10] sm:$0xf]  ;;  %v220_v34 = vld [vmem:[%s2325_s1 + $0x8] sm:$0xf]  ;;  %v224_v38 = vld [vmem:[%s2325_s1 + $0x18] sm:$0xf] }
  0x13   :  { %v221_v42 = vld [vmem:[%s2325_s1 + $0xc] sm:$0xf]  ;;  %v226_v47 = vld [vmem:[%s2325_s1 + $0x20] sm:$0xf]  ;;  %v223_v51 = vld [vmem:[%s2325_s1 + $0x14] sm:$0xf] }
  0x14   :  { %v228_v54 = vld [vmem:[%s2325_s1 + $0x28] sm:$0xf]  ;;  %v225_v57 = vld [vmem:[%s2325_s1 + $0x1c] sm:$0xf]  ;;  %v230_v60 = vld [vmem:[%s2325_s1 + $0x30] sm:$0xf] }
  0x15   :  { %v227_v63 = vld [vmem:[%s2325_s1 + $0x24] sm:$0xf]  ;;  %v232_v2 = vld [vmem:[%s2325_s1 + $0x38] sm:$0xf]  ;;  %v229_v5 = vld [vmem:[%s2325_s1 + $0x2c] sm:$0xf] }
  0x16   :  { %1605 = vmatmul.mubr.msk.bf16.gmra.mxu0 %vm76_vm1, %v1748_v7 }
  0x17   :  { %1608 = vmatprep.mubr.msk.bf16.mxu0 %vm76_vm1, %v1749_v8  ;;  %v231_v8 = vld [vmem:[%s2325_s1 + $0x34] sm:$0xf] }
  0x1e   :  { %1609 = vmatmul.mubr.msk.bf16.gmra.mxu0 %vm76_vm1, %v1750_v9 }
  0x1f   :  { %1614 = vmatprep.mubr.msk.bf16.mxu0 %vm1896_vm2, %v1895_v10 }
  0xc6   :  { %v1598_v11 = vpop.f32.mrf.mxu0 }
  0xc7   :  { %v204_v20 = vpack.c.bf16 %v1598_v11, %v1598_v11  ;;  %v233_v11 = vld [vmem:[%s2325_s1 + $0x3c] sm:$0xf]  ;;  %s1897_s1 = smov 96  }
  0xc8   :  { %v139_v12 = vpop.f32.mrf.mxu0 }
  0xc9   :  { %v202_v13 = vpack.c.bf16 %v139_v12, %v139_v12  ;;  %v335_v27 = vsel %vm101_vm0, %v204_v20, 0  ;;  %v2100_v12 = vld [vmem:[%s2327_s3] ss:$0 sm:$0xff] }
  0xca   :  { %v1599_v14 = vpop.f32.mrf.mxu0 }
  0xcb   :  { %v243_v15 = vsel %vm101_vm0, %v202_v13, 0  ;;  %v205_v33 = vpack.c.bf16 %v1599_v14, %v1599_v14 }
  0xcc   :  { %v142_v16 = vpop.f32.mrf.mxu0  ;;  %1613 = vmatpush3.bf16.msra.mxu0 %v243_v15 }
  0xcd   :  { %v203_v18 = vpack.c.bf16 %v142_v16, %v142_v16  ;;  %1636 = vmatprep.subr.bf16.mxu0 %v1895_v10  ;;  %v381_v37 = vsel %vm101_vm0, %v205_v33, 0 }
  0xce   :  { %v1602_v19 = vpop.f32.mrf.mxu0 }
  0xcf   :  { %1615 = vmatmul.mubr.msk.bf16.vlgmr.msra.gmra.mxu0 %vm76_vm1, %v218_v17  ;;  %v289_v21 = vsel %vm101_vm0, %v203_v18, 0  ;;  %v208_v24 = vpack.c.bf16 %v1602_v19, %v1602_v19 }
  0xd0   :  { %v155_v22 = vpop.f32.mrf.mxu0  ;;  %1619 = vmatpush3.bf16.msra.mxu1 %v289_v21  ;;  %1638 = vmatprep.mubr.msk.bf16.mxu0 %vm1896_vm2, %v1895_v10 }
  0xd1   :  { %v206_v25 = vpack.c.bf16 %v155_v22, %v155_v22  ;;  %1624 = vmatprep.subr.bf16.mxu1 %v1895_v10  ;;  %v519_v31 = vsel %vm101_vm0, %v208_v24, 0 }
  0xd2   :  { %v1603_v26 = vpop.f32.mrf.mxu0 }
  0xd3   :  { %v427_v28 = vsel %vm101_vm0, %v206_v25, 0  ;;  %1621 = vmatmul.mubr.msk.bf16.vlgmr.msra.gmra.mxu1 %vm76_vm1, %v219_v23  ;;  %v209_v50 = vpack.c.bf16 %v1603_v26, %v1603_v26 }
  0xd4   :  { %1625 = vmatpush3.bf16.msra.mxu1 %v335_v27  ;;  %1637 = vmatpush3.bf16.msra.mxu0 %v427_v28  ;;  %v158_v30 = vpop.f32.mrf.mxu0 }
  0xd5   :  { %1626 = vmatprep.mubr.msk.bf16.mxu1 %vm1896_vm2, %v1895_v10  ;;  %1630 = vmatprep.subr.bf16.mxu1 %v1895_v10  ;;  %v207_v41 = vpack.c.bf16 %v158_v30, %v158_v30  ;;  %v565_v53 = vsel %vm101_vm0, %v209_v50, 0 }
  0xd6   :  { %1648 = vmatprep.subr.bf16.mxu0 %v1895_v10  ;;  %v1606_v32 = vpop.f32.mrf.mxu0 }
  0xd7   :  { %1639 = vmatmul.mubr.msk.bf16.vlgmr.msra.gmra.mxu0 %vm76_vm1, %v222_v29  ;;  %v212_v44 = vpack.c.bf16 %v1606_v32, %v1606_v32  ;;  %v473_v46 = vsel %vm101_vm0, %v207_v41, 0 }
  0xd8   :  { %1649 = vmatpush3.bf16.msra.mxu0 %v519_v31  ;;  %1650 = vmatprep.mubr.msk.bf16.mxu0 %vm1896_vm2, %v1895_v10  ;;  %v171_v35 = vpop.f32.mrf.mxu0 }
  0xd9   :  { %v210_v36 = vpack.c.bf16 %v171_v35, %v171_v35  ;;  %1660 = vmatprep.subr.bf16.mxu0 %v1895_v10  ;;  %v703_v48 = vsel %vm101_vm0, %v212_v44, 0 }
  0xda   :  { %v1607_v39 = vpop.f32.mrf.mxu0 }
  0xdb   :  { %1627 = vmatmul.mubr.msk.bf16.vlgmr.msra.gmra.mxu1 %vm76_vm1, %v220_v34  ;;  %v611_v40 = vsel %vm101_vm0, %v210_v36, 0  ;;  %v213_v62 = vpack.c.bf16 %v1607_v39, %v1607_v39 }
  0xdc   :  { %1631 = vmatpush3.bf16.msra.mxu1 %v381_v37  ;;  %1632 = vmatprep.mubr.msk.bf16.mxu1 %vm1896_vm2, %v1895_v10  ;;  %v174_v43 = vpop.f32.mrf.mxu0 }
  0xdd   :  { %1642 = vmatprep.subr.bf16.mxu1 %v1895_v10  ;;  %v211_v56 = vpack.c.bf16 %v174_v43, %v174_v43  ;;  %v749_v1 = vsel %vm101_vm0, %v213_v62, 0 }
  0xde   :  { %v1610_v45 = vpop.f32.mrf.mxu0 }
  0xdf   :  { %1651 = vmatmul.mubr.msk.bf16.vlgmr.msra.gmra.mxu0 %vm76_vm1, %v224_v38  ;;  %v216_v58 = vpack.c.bf16 %v1610_v45, %v1610_v45  ;;  %v657_v59 = vsel %vm101_vm0, %v211_v56, 0 }
  0xe0   :  { %1661 = vmatpush3.bf16.msra.mxu0 %v611_v40  ;;  %1662 = vmatprep.mubr.msk.bf16.mxu0 %vm1896_vm2, %v1895_v10  ;;  %v187_v49 = vpop.f32.mrf.mxu0 }
  0xe1   :  { %1672 = vmatprep.subr.bf16.mxu0 %v1895_v10  ;;  %v214_v52 = vpack.c.bf16 %v187_v49, %v187_v49  ;;  %v887_v61 = vsel %vm101_vm0, %v216_v58, 0 }
  0xe2   :  { %v1611_v0 = vpop.f32.mrf.mxu0 }
  0xe3   :  { %1633 = vmatmul.mubr.msk.bf16.vlgmr.msra.gmra.mxu1 %vm76_vm1, %v221_v42  ;;  %v795_v55 = vsel %vm101_vm0, %v214_v52, 0  ;;  %v217_v7 = vpack.c.bf16 %v1611_v0, %v1611_v0 }
  0xe4   :  { %1643 = vmatpush3.bf16.msra.mxu1 %v473_v46  ;;  %1644 = vmatprep.mubr.msk.bf16.mxu1 %vm1896_vm2, %v1895_v10  ;;  %v190_v3 = vpop.f32.mrf.mxu0 }
  0xe5   :  { %1654 = vmatprep.subr.bf16.mxu1 %v1895_v10  ;;  %v215_v4 = vpack.c.bf16 %v190_v3, %v190_v3  ;;  %v933_v9 = vsel %vm101_vm0, %v217_v7, 0 }
  0xe7   :  { %1663 = vmatmul.mubr.msk.bf16.vlgmr.msra.gmra.mxu0 %vm76_vm1, %v226_v47  ;;  %v841_v6 = vsel %vm101_vm0, %v215_v4, 0 }
  0xe8   :  { %1673 = vmatpush3.bf16.msra.mxu0 %v703_v48  ;;  %1674 = vmatprep.mubr.msk.bf16.mxu0 %vm1896_vm2, %v1895_v10 }
  0xe9   :  { %1684 = vmatprep.subr.bf16.mxu0 %v1895_v10 }
  0xeb   :  { %1645 = vmatmul.mubr.msk.bf16.vlgmr.msra.gmra.mxu1 %vm76_vm1, %v223_v51 }
  0xec   :  { %1655 = vmatpush3.bf16.msra.mxu1 %v565_v53  ;;  %1656 = vmatprep.mubr.msk.bf16.mxu1 %vm1896_vm2, %v1895_v10 }
  0xed   :  { %1666 = vmatprep.subr.bf16.mxu1 %v1895_v10 }
  0xef   :  { %1675 = vmatmul.mubr.msk.bf16.vlgmr.msra.gmra.mxu0 %vm76_vm1, %v228_v54 }
  0xf0   :  { %1685 = vmatpush3.bf16.msra.mxu0 %v795_v55  ;;  %1686 = vmatprep.mubr.msk.bf16.mxu0 %vm1896_vm2, %v1895_v10 }
  0xf1   :  { %1696 = vmatprep.subr.bf16.mxu0 %v1895_v10 }
  0xf3   :  { %1657 = vmatmul.mubr.msk.bf16.vlgmr.msra.gmra.mxu1 %vm76_vm1, %v225_v57 }
  0xf4   :  { %1667 = vmatpush3.bf16.msra.mxu1 %v657_v59  ;;  %1668 = vmatprep.mubr.msk.bf16.mxu1 %vm1896_vm2, %v1895_v10 }
  0xf5   :  { %1678 = vmatprep.subr.bf16.mxu1 %v1895_v10 }
  0xf7   :  { %1687 = vmatmul.mubr.msk.bf16.vlgmr.msra.gmra.mxu0 %vm76_vm1, %v230_v60 }
  0xf8   :  { %1697 = vmatpush3.bf16.msra.mxu0 %v887_v61  ;;  %1698 = vmatprep.mubr.msk.bf16.mxu0 %vm1896_vm2, %v1895_v10 }
  0xf9   :  { %1708 = vmatprep.subr.bf16.mxu0 %v1895_v10 }
  0xfb   :  { %1669 = vmatmul.mubr.msk.bf16.vlgmr.msra.gmra.mxu1 %vm76_vm1, %v227_v63 }
  0xfc   :  { %1679 = vmatpush3.bf16.msra.mxu1 %v749_v1  ;;  %1680 = vmatprep.mubr.msk.bf16.mxu1 %vm1896_vm2, %v1895_v10 }
  0xfd   :  { %1690 = vmatprep.subr.bf16.mxu1 %v1895_v10 }
  0xff   :  { %1699 = vmatmul.mubr.msk.bf16.vlgmr.msra.gmra.mxu0 %vm76_vm1, %v232_v2 }
 0x100   :  { %1712 = vmatprep.mubr.msk.bf16.mxu0 %vm1896_vm2, %v1895_v10 }
 0x103   :  { %1681 = vmatmul.mubr.msk.bf16.vlgmr.msra.gmra.mxu1 %vm76_vm1, %v229_v5 }
 0x104   :  { %1691 = vmatpush3.bf16.msra.mxu1 %v841_v6  ;;  %1692 = vmatprep.mubr.msk.bf16.mxu1 %vm1896_vm2, %v1895_v10 }
 0x105   :  { %1702 = vmatprep.subr.bf16.mxu1 %v1895_v10 }
 0x10b   :  { %1693 = vmatmul.mubr.msk.bf16.vlgmr.msra.gmra.mxu1 %vm76_vm1, %v231_v8 }
 0x10c   :  { %1703 = vmatpush3.bf16.msra.mxu1 %v933_v9  ;;  %1704 = vmatprep.mubr.msk.bf16.mxu1 %vm1896_vm2, %v1895_v10 }
 0x10d   :  { %1716 = vmatprep.subr.bf16.mxu1 %v1895_v10 }
 0x113   :  { %1705 = vmatmul.mubr.msk.bf16.vlgmr.msra.gmra.mxu1 %vm76_vm1, %v233_v11 }
 0x114   :  { %1732 = vmatprep.mubr.msk.bf16.mxu1 %vm1896_vm2, %v1895_v10 }
 0x18f   :  { %v279_v13 = vpop.f32.mrf.mxu0 }
 0x190   :  { %v2103_v14 = vadd.f32 %v2100_v12, %v279_v13 }
 0x191   :  { %v1616_v15 = vpop.f32.mrf.mxu0 }
 0x192   :  { %1761 = vtanh.f32 %v2103_v14 }
 0x193   :  { %v282_v16 = vpop.f32.mrf.mxu0  ;;  %v325_v17 = vpop.f32.mrf.mxu1 }
 0x194   :  { %v2107_v18 = vadd.f32 %v2100_v12, %v325_v17 }
 0x195   :  { %v1617_v19 = vpop.f32.mrf.mxu0  ;;  %v1622_v20 = vpop.f32.mrf.mxu1 }
 0x196   :  { %1763 = vtanh.f32 %v2107_v18 }
 0x197   :  { %v328_v21 = vpop.f32.mrf.mxu1  ;;  %v463_v22 = vpop.f32.mrf.mxu0 }
 0x198   :  { %v2111_v23 = vadd.f32 %v2100_v12, %v463_v22 }
 0x199   :  { %v1623_v24 = vpop.f32.mrf.mxu1  ;;  %v1640_v25 = vpop.f32.mrf.mxu0 }
 0x19a   :  { %1765 = vtanh.f32 %v2111_v23 }
 0x19b   :  { %v371_v26 = vpop.f32.mrf.mxu1  ;;  %v466_v27 = vpop.f32.mrf.mxu0 }
 0x19c   :  { %v2115_v28 = vadd.f32 %v2100_v12, %v371_v26 }
 0x19d   :  { %v1628_v29 = vpop.f32.mrf.mxu1  ;;  %v1641_v30 = vpop.f32.mrf.mxu0 }
 0x19e   :  { %1767 = vtanh.f32 %v2115_v28 }
 0x19f   :  { %v1762_v31 = vpop.eup %1761  ;;  %v374_v32 = vpop.f32.mrf.mxu1 }
 0x1a0   :  { %v555_v33 = vpop.f32.mrf.mxu0  ;;  %1119 = vrot.lane.b32.xlu0 %v1762_v31, %s1897_s1 }
 0x1a1   :  { %v2119_v34 = vadd.f32 %v2100_v12, %v555_v33  ;;  %v1629_v35 = vpop.f32.mrf.mxu1 }
 0x1a2   :  { %v1652_v36 = vpop.f32.mrf.mxu0 }
 0x1a3   :  { %1769 = vtanh.f32 %v2119_v34  ;;  %v1764_v37 = vpop.eup %1763  ;;  %v417_v38 = vpop.f32.mrf.mxu1 }
 0x1a4   :  { %v558_v39 = vpop.f32.mrf.mxu0  ;;  %v2124_v40 = vadd.f32 %v2100_v12, %v417_v38  ;;  %1121 = vrot.lane.b32.xlu0 %v1764_v37, %s1897_s1 }
 0x1a5   :  { %v1634_v41 = vpop.f32.mrf.mxu1 }
 0x1a6   :  { %v1653_v42 = vpop.f32.mrf.mxu0  ;;  %1771 = vtanh.f32 %v2124_v40 }
 0x1a7   :  { %v1766_v43 = vpop.eup %1765  ;;  %v420_v44 = vpop.f32.mrf.mxu1 }
 0x1a8   :  { %v647_v45 = vpop.f32.mrf.mxu0  ;;  %1127 = vrot.lane.b32.xlu0 %v1766_v43, %s1897_s1 }
 0x1a9   :  { %v2129_v46 = vadd.f32 %v2100_v12, %v647_v45  ;;  %v1635_v47 = vpop.f32.mrf.mxu1 }
 0x1aa   :  { %v1664_v48 = vpop.f32.mrf.mxu0 }
 0x1ab   :  { %1773 = vtanh.f32 %v2129_v46  ;;  %v1768_v49 = vpop.eup %1767  ;;  %v509_v50 = vpop.f32.mrf.mxu1 }
 0x1ac   :  { %v650_v51 = vpop.f32.mrf.mxu0  ;;  %v2134_v52 = vadd.f32 %v2100_v12, %v509_v50  ;;  %1123 = vrot.lane.b32.xlu0 %v1768_v49, %s1897_s1 }
 0x1ad   :  { %v1646_v53 = vpop.f32.mrf.mxu1 }
 0x1ae   :  { %v1665_v54 = vpop.f32.mrf.mxu0  ;;  %1775 = vtanh.f32 %v2134_v52 }
 0x1af   :  { %v512_v56 = vpop.f32.mrf.mxu1 }
 0x1b0   :  { %v1770_v55 = vpop.eup %1769  ;;  %v739_v57 = vpop.f32.mrf.mxu0  ;;  %v1507_v56 = vmul.f32 -1.442695, %v2107_v18 }
 0x1b1   :  { %v2139_v58 = vadd.f32 %v2100_v12, %v739_v57  ;;  %1131 = vrot.lane.b32.xlu0 %v1770_v55, %s1897_s1  ;;  %v1647_v59 = vpop.f32.mrf.mxu1  ;;  %v1506_v55 = vmul.f32 -1.442695, %v2103_v14  ;;  %v1508_v57 = vmul.f32 -1.442695, %v2115_v28  ;;  %v1510_v14 = vmul.f32 -1.442695, %v2111_v23 }
 0x1b2   :  { %v1676_v60 = vpop.f32.mrf.mxu0  ;;  %v1752_v59 = vld [vmem:[%s2326_s2 + $0x8] sm:$0xff]  }
 0x1b3   :  { %1777 = vtanh.f32 %v2139_v58  ;;  %v1772_v61 = vpop.eup %1771  ;;  %v601_v62 = vpop.f32.mrf.mxu1  ;;  %v1754_v23 = vld [vmem:[%s2326_s2 + $0x48] sm:$0xff]  }
 0x1b4   :  { %v742_v63 = vpop.f32.mrf.mxu0  ;;  %v2144_v0 = vadd.f32 %v2100_v12, %v601_v62 }
 0x1b5   :  { %1125 = vrot.lane.b32.xlu0 %v1772_v61, %s1897_s1  ;;  %v1658_v1 = vpop.f32.mrf.mxu1  ;;  %v1509_v61 = vmul.f32 -1.442695, %v2124_v40  ;;  %v1512_v63 = vmul.f32 -1.442695, %v2119_v34  ;;  %v1755_v34 = vld [vmem:[%s2326_s2 + $0x40] sm:$0xff]  }
 0x1b6   :  { %v1677_v2 = vpop.f32.mrf.mxu0  ;;  %1779 = vtanh.f32 %v2144_v0  ;;  %v1511_v1 = vmul.f32 -1.442695, %v2134_v52 }
 0x1b7   :  { %v604_v4 = vpop.f32.mrf.mxu1  ;;  %v1753_v2 = vld [vmem:[%s2326_s2 + $0x50] sm:$0xff]  }
 0x1b8   :  { %v1774_v3 = vpop.eup %1773  ;;  %v831_v5 = vpop.f32.mrf.mxu0  ;;  %1717 = vmatpush3.bf16.msra.mxu1 %v1753_v2 }
 0x1b9   :  { %v2149_v6 = vadd.f32 %v2100_v12, %v831_v5  ;;  %1135 = vrot.lane.b32.xlu1 %v1774_v3, %s1897_s1  ;;  %v1659_v7 = vpop.f32.mrf.mxu1  ;;  %1718 = vmatprep.subr.bf16.mxu1 %v1895_v10  ;;  %v1513_v5 = vmul.f32 -1.442695, %v2144_v0  ;;  %v1757_v0 = vld [vmem:[%s2326_s2 + $0x30] sm:$0xff]  }
 0x1ba   :  { %v1688_v8 = vpop.f32.mrf.mxu0 }
 0x1bb   :  { %1781 = vtanh.f32 %v2149_v6  ;;  %v1776_v9 = vpop.eup %1775  ;;  %v693_v11 = vpop.f32.mrf.mxu1  ;;  %v1756_v8 = vld [vmem:[%s2326_s2 + $0x38] sm:$0xff]  }
 0x1bc   :  { %v834_v13 = vpop.f32.mrf.mxu0  ;;  %v2154_v15 = vadd.f32 %v2100_v12, %v693_v11  ;;  %1129 = vrot.lane.b32.xlu0 %v1776_v9, %s1897_s1  ;;  %1719 = vmatpush3.bf16.msra.mxu1 %v1754_v23  ;;  %v1514_v11 = vmul.f32 -1.442695, %v2129_v46  ;;  %v2221_v46 = vld [vmem:[%s2327_s3 + $0x8] sm:$0xff] }
 0x1bd   :  { %v1670_v16 = vpop.f32.mrf.mxu1  ;;  %1720 = vmatprep.subr.bf16.mxu1 %v1895_v10 }
 0x1be   :  { %v1689_v17 = vpop.f32.mrf.mxu0  ;;  %1783 = vtanh.f32 %v2154_v15 }
 0x1bf   :  { %v696_v20 = vpop.f32.mrf.mxu1 }
 0x1c0   :  { %v1778_v19 = vpop.eup %1777  ;;  %v923_v21 = vpop.f32.mrf.mxu0  ;;  %1721 = vmatpush3.bf16.msra.mxu1 %v1755_v34  ;;  %v1516_v20 = vmul.f32 -1.442695, %v2139_v58  ;;  %v2227_v58 = vld [vmem:[%s2327_s3 + $0x10] sm:$0xff] }
 0x1c1   :  { %v2159_v22 = vadd.f32 %v2100_v12, %v923_v21  ;;  %1139 = vrot.lane.b32.xlu1 %v1778_v19, %s1897_s1  ;;  %v1671_v24 = vpop.f32.mrf.mxu1  ;;  %1722 = vmatprep.subr.bf16.mxu1 %v1895_v10 }
 0x1c2   :  { %v1700_v25 = vpop.f32.mrf.mxu0 }
 0x1c3   :  { %1785 = vtanh.f32 %v2159_v22  ;;  %v1780_v26 = vpop.eup %1779  ;;  %v785_v27 = vpop.f32.mrf.mxu1 }
 0x1c4   :  { %v926_v29 = vpop.f32.mrf.mxu0  ;;  %v2164_v30 = vadd.f32 %v2100_v12, %v785_v27  ;;  %1133 = vrot.lane.b32.xlu0 %v1780_v26, %s1897_s1  ;;  %1723 = vmatpush3.bf16.msra.mxu1 %v1756_v8  ;;  %v1515_v26 = vmul.f32 -1.442695, %v2154_v15 }
 0x1c5   :  { %v1682_v31 = vpop.f32.mrf.mxu1  ;;  %1724 = vmatprep.subr.bf16.mxu1 %v1895_v10 }
 0x1c6   :  { %v1701_v32 = vpop.f32.mrf.mxu0  ;;  %1787 = vtanh.f32 %v2164_v30 }
 0x1c7   :  { %v788_v35 = vpop.f32.mrf.mxu1 }
 0x1c8   :  { %v1782_v33 = vpop.eup %1781  ;;  %1725 = vmatpush3.bf16.msra.mxu1 %v1757_v0  ;;  %v2263_v0 = vld [vmem:[%s2327_s3 + $0x38] sm:$0xff] }
 0x1c9   :  { %1143 = vrot.lane.b32.xlu1 %v1782_v33, %s1897_s1  ;;  %v1683_v36 = vpop.f32.mrf.mxu1  ;;  %1726 = vmatprep.subr.bf16.mxu1 %v1895_v10 }
 0x1cb   :  { %v1784_v37 = vpop.eup %1783  ;;  %v877_v38 = vpop.f32.mrf.mxu1 }
 0x1cc   :  { %v2170_v39 = vadd.f32 %v2100_v12, %v877_v38  ;;  %v1518_v38 = vmul.f32 -1.442695, %v2149_v6 }
 0x1cd   :  { %1137 = vrot.lane.b32.xlu1 %v1784_v37, %s1897_s1  ;;  %v1694_v41 = vpop.f32.mrf.mxu1 }
 0x1ce   :  { %1789 = vtanh.f32 %v2170_v39 }
 0x1cf   :  { %v880_v43 = vpop.f32.mrf.mxu1 }
 0x1d0   :  { %v1786_v42 = vpop.eup %1785 }
 0x1d1   :  { %1147 = vrot.lane.b32.xlu1 %v1786_v42, %s1897_s1  ;;  %v1695_v44 = vpop.f32.mrf.mxu1 }
 0x1d2   :  { %v1517_v44 = vmul.f32 -1.442695, %v2164_v30  ;;  %v1520_v30 = vmul.f32 -1.442695, %v2159_v22  ;;  %v2253_v22 = vld [vmem:[%s2327_s3 + $0x20] sm:$0xff] }
 0x1d3   :  { %v1788_v45 = vpop.eup %1787  ;;  %v969_v47 = vpop.f32.mrf.mxu1 }
 0x1d4   :  { %v2176_v48 = vadd.f32 %v2100_v12, %v969_v47  ;;  %v1751_v12 = vld [vmem:[%s2326_s2 + $0x10] sm:$0xff]  }
 0x1d5   :  { %1141 = vrot.lane.b32.xlu1 %v1788_v45, %s1897_s1  ;;  %v1706_v49 = vpop.f32.mrf.mxu1  ;;  %1709 = vmatpush3.bf16.msra.mxu0 %v1751_v12 }
 0x1d6   :  { %1791 = vtanh.f32 %v2176_v48  ;;  %1710 = vmatprep.subr.bf16.mxu0 %v1895_v10  ;;  %v2239_v49 = vld [vmem:[%s2327_s3 + $0x18] sm:$0xff] }
 0x1d7   :  { %v972_v50 = vpop.f32.mrf.mxu1  ;;  %1793 = vpow2.f32 %v1506_v55 }
 0x1d8   :  { %1795 = vpow2.f32 %v1507_v56 }
 0x1d9   :  { %v1707_v51 = vpop.f32.mrf.mxu1  ;;  %1797 = vpow2.f32 %v1508_v57  ;;  %1711 = vmatpush3.bf16.msra.mxu0 %v1752_v59 }
 0x1da   :  { %1799 = vpow2.f32 %v1510_v14 }
 0x1db   :  { %v1790_v53 = vpop.eup %1789 }
 0x1dc   :  { %1145 = vrot.lane.b32.xlu1 %v1790_v53, %s1897_s1 }
 0x1e3   :  { %v1792_v54 = vpop.eup %1791 }
 0x1e4   :  { %1149 = vrot.lane.b32.xlu1 %v1792_v54, %s1897_s1  ;;  %v1794_v60 = vpop.eup %1793 }
 0x1e5   :  { %v1023_v18 = vadd.f32 1.0, %v1794_v60  ;;  %v1796_v62 = vpop.eup %1795 }
 0x1e6   :  { %v1024_v28 = vadd.f32 1.0, %v1796_v62  ;;  %v1798_v3 = vpop.eup %1797 }
 0x1e7   :  { %1801 = vrcp.f32 %v1023_v18  ;;  %v1025_v40 = vadd.f32 1.0, %v1798_v3  ;;  %v1800_v52 = vpop.eup %1799 }
 0x1e8   :  { %1803 = vpow2.f32 %v1509_v61  ;;  %v1027_v9 = vadd.f32 1.0, %v1800_v52  ;;  %v1519_v61 = vmul.f32 -1.442695, %v2170_v39 }
 0x1e9   :  { %1805 = vrcp.f32 %v1024_v28 }
 0x1ea   :  { %1807 = vpow2.f32 %v1512_v63 }
 0x1eb   :  { %1809 = vpow2.f32 %v1511_v1  ;;  %v2248_v1 = vld [vmem:[%s2327_s3 + $0x28] sm:$0xff] }
 0x1ec   :  { %1811 = vrcp.f32 %v1025_v40 }
 0x1ed   :  { %1813 = vpow2.f32 %v1513_v5 }
 0x1ee   :  { %1815 = vrcp.f32 %v1027_v9 }
 0x1ef   :  { %1817 = vpow2.f32 %v1514_v11 }
 0x1f4   :  { %v1802_v4 = vpop.eup %1801 }
 0x1f5   :  { %v1804_v7 = vpop.eup %1803  ;;  %v1087_v13 = vsub.f32 1.0, %v1802_v4 }
 0x1f6   :  { %v1026_v16 = vadd.f32 1.0, %v1804_v7  ;;  %v1806_v17 = vpop.eup %1805 }
 0x1f7   :  { %v1808_v24 = vpop.eup %1807  ;;  %v1088_v27 = vsub.f32 1.0, %v1806_v17 }
 0x1f8   :  { %v1810_v25 = vpop.eup %1809  ;;  %1819 = vrcp.f32 %v1026_v16  ;;  %v1029_v33 = vadd.f32 1.0, %v1808_v24 }
 0x1f9   :  { %1821 = vpow2.f32 %v1516_v20  ;;  %v1028_v35 = vadd.f32 1.0, %v1810_v25  ;;  %v1812_v36 = vpop.eup %1811  ;;  %v2268_v20 = vld [vmem:[%s2327_s3 + $0x30] sm:$0xff] }
 0x1fa   :  { %1823 = vpow2.f32 %v1515_v26  ;;  %v1089_v45 = vsub.f32 1.0, %v1812_v36  ;;  %v1814_v47 = vpop.eup %1813 }
 0x1fb   :  { %1825 = vrcp.f32 %v1029_v33  ;;  %v1816_v6 = vpop.eup %1815  ;;  %v1030_v55 = vadd.f32 1.0, %v1814_v47 }
 0x1fc   :  { %1827 = vrcp.f32 %v1028_v35  ;;  %v1818_v53 = vpop.eup %1817  ;;  %v1091_v57 = vsub.f32 1.0, %v1816_v6 }
 0x1fd   :  { %1829 = vpow2.f32 %v1518_v38  ;;  %v1031_v18 = vadd.f32 1.0, %v1818_v53 }
 0x1fe   :  { %1831 = vpow2.f32 %v1517_v44 }
 0x1ff   :  { %1833 = vrcp.f32 %v1030_v55 }
 0x200   :  { %1835 = vpow2.f32 %v1520_v30 }
 0x201   :  { %1837 = vrcp.f32 %v1031_v18 }
 0x202   :  { %1839 = vpow2.f32 %v1519_v61 }
 0x205   :  { %v1820_v56 = vpop.eup %1819 }
 0x206   :  { %v1822_v60 = vpop.eup %1821  ;;  %v1090_v28 = vsub.f32 1.0, %v1820_v56 }
 0x207   :  { %v1824_v63 = vpop.eup %1823  ;;  %v1033_v23 = vadd.f32 1.0, %v1822_v60 }
 0x208   :  { %v1826_v40 = vpop.eup %1825  ;;  %v1032_v4 = vadd.f32 1.0, %v1824_v63 }
 0x209   :  { %v1828_v39 = vpop.eup %1827  ;;  %v1093_v5 = vsub.f32 1.0, %v1826_v40  ;;  %1841 = vrcp.f32 %v1033_v23 }
 0x20a   :  { %v1830_v8 = vpop.eup %1829  ;;  %v1092_v11 = vsub.f32 1.0, %v1828_v39  ;;  %1843 = vrcp.f32 %v1032_v4 }
 0x20b   :  { %v1035_v26 = vadd.f32 1.0, %v1830_v8 }
 0x212   :  { %v1120_v19 = vpop.permute.xlu0 %1119 }
 0x213   :  { %v1167_v21 = vmul.f32 %v1120_v19, %v1087_v13  ;;  %v1521_v13 = vmul.f32 -1.442695, %v2176_v48  ;;  %v1832_v19 = vpop.eup %1831 }
 0x215   :  { %v1191_v31 = vmul.f32 %v2221_v46, %v1167_v21  ;;  %1845 = vpow2.f32 %v1521_v13 }
 0x216   :  { %v1122_v29 = vpop.permute.xlu0 %1121  ;;  %1847 = vrcp.f32 %v1035_v26 }
 0x217   :  { %v1168_v32 = vmul.f32 %v1122_v29, %v1088_v27  ;;  %v1208_v41 = vsel %vm1207_vm3, %v1191_v31, 0.0  ;;  %v1034_v29 = vadd.f32 1.0, %v1832_v19  ;;  %v1834_v31 = vpop.eup %1833 }
 0x218   :  { %v1836_v35 = vpop.eup %1835  ;;  %v1094_v38 = vsub.f32 1.0, %v1834_v31 }
 0x219   :  { %v1192_v15 = vmul.f32 %v2227_v58, %v1168_v32  ;;  %v1838_v36 = vpop.eup %1837  ;;  %1849 = vrcp.f32 %v1034_v29 }
 0x21a   :  { %v1128_v37 = vpop.permute.xlu0 %1127  ;;  %v1095_v6 = vsub.f32 1.0, %v1838_v36  ;;  %v1523_v36 = vld [vmem:[%s2327_s3 + $0x2] ss:$0 sm:$0xff] }
 0x21b   :  { %v1209_v42 = vsel %vm1207_vm3, %v1192_v15, 0.0  ;;  %v1171_v62 = vmul.f32 %v1128_v37, %v1091_v57 }
 0x21c   :  { %v1210_v43 = vadd.f32 %v1209_v42, %v1208_v41  ;;  %v1840_v41 = vpop.eup %1839 }
 0x21d   :  { %v1195_v34 = vmul.f32 %v2248_v1, %v1171_v62 }
 0x21e   :  { %v1124_v50 = vpop.permute.xlu0 %1123 }
 0x21f   :  { %v1169_v51 = vmul.f32 %v1124_v50, %v1089_v45  ;;  %v1215_v16 = vsel %vm1207_vm3, %v1195_v34, 0.0  ;;  %v1037_v50 = vadd.f32 1.0, %v1836_v35 }
 0x221   :  { %v1193_v54 = vmul.f32 %v2239_v49, %v1169_v51  ;;  %v1842_v51 = vpop.eup %1841  ;;  %1851 = vrcp.f32 %v1037_v50 }
 0x222   :  { %v1844_v55 = vpop.eup %1843  ;;  %v1097_v30 = vsub.f32 1.0, %v1842_v51 }
 0x223   :  { %v1132_v12 = vpop.permute.xlu0 %1131  ;;  %v1211_v59 = vsel %vm1207_vm3, %v1193_v54, 0.0  ;;  %v1036_v54 = vadd.f32 1.0, %v1840_v41  ;;  %v1846_v18 = vpop.eup %1845 }
 0x224   :  { %v1212_v14 = vadd.f32 %v1211_v59, %v1210_v43  ;;  %v1173_v17 = vmul.f32 %v1132_v12, %v1093_v5  ;;  %v2277_v43 = vld [vmem:[%s2327_s3 + $0x40] sm:$0xff]  ;;  %v1848_v63 = vpop.eup %1847  ;;  %v1038_v23 = vadd.f32 1.0, %v1846_v18  ;;  %v1760_v18 = vld [vmem:[%s2326_s2 + $0x18] sm:$0xff]  }
 0x225   :  { %1853 = vrcp.f32 %v1036_v54 }
 0x226   :  { %v1197_v48 = vmul.f32 %v2263_v0, %v1173_v17  ;;  %v1850_v40 = vpop.eup %1849  ;;  %1855 = vrcp.f32 %v1038_v23 }
 0x227   :  { %v1126_v2 = vpop.permute.xlu0 %1125 }
 0x228   :  { %v1170_v3 = vmul.f32 %v1126_v2, %v1090_v28  ;;  %v1219_v37 = vsel %vm1207_vm3, %v1197_v48, 0.0 }
 0x22a   :  { %v1194_v52 = vmul.f32 %v2253_v22, %v1170_v3 }
 0x22b   :  { %v1136_v32 = vpop.permute.xlu1 %1135 }
 0x22c   :  { %v1213_v7 = vsel %vm1207_vm3, %v1194_v52, 0.0  ;;  %v1175_v12 = vmul.f32 %v1136_v32, %v1095_v6  ;;  %v1099_v52 = vsub.f32 1.0, %v1848_v63  ;;  %v1522_v32 = vld [vmem:[%s2327_s3 + $0x1] ss:$0 sm:$0xff] }
 0x22d   :  { %v1214_v9 = vadd.f32 %v1213_v7, %v1212_v14  ;;  %v1096_v14 = vsub.f32 1.0, %v1844_v55 }
 0x22e   :  { %v1130_v24 = vpop.permute.xlu0 %1129  ;;  %v1199_v62 = vmul.f32 %v2221_v46, %v1175_v12 }
 0x22f   :  { %v1216_v21 = vadd.f32 %v1215_v16, %v1214_v9  ;;  %v1172_v25 = vmul.f32 %v1130_v24, %v1092_v11  ;;  %v1098_v9 = vsub.f32 1.0, %v1850_v40 }
 0x230   :  { %v1223_v34 = vsel %vm1207_vm3, %v1199_v62, 0.0 }
 0x231   :  { %v1196_v27 = vmul.f32 %v2268_v20, %v1172_v25 }
 0x233   :  { %v1217_v33 = vsel %vm1207_vm3, %v1196_v27, 0.0  ;;  %v1140_v42 = vpop.permute.xlu1 %1139 }
 0x234   :  { %v1218_v15 = vadd.f32 %v1217_v33, %v1216_v21  ;;  %v1177_v60 = vmul.f32 %v1140_v42, %v1097_v30 }
 0x236   :  { %v1134_v44 = vpop.permute.xlu0 %1133  ;;  %v1220_v45 = vadd.f32 %v1219_v37, %v1218_v15  ;;  %v1201_v2 = vmul.f32 %v2239_v49, %v1177_v60  ;;  %v1852_v49 = vpop.eup %1851 }
 0x237   :  { %v1174_v47 = vmul.f32 %v1134_v44, %v1094_v38  ;;  %v1854_v17 = vpop.eup %1853  ;;  %v1101_v19 = vsub.f32 1.0, %v1852_v49 }
 0x238   :  { %v1226_v7 = vsel %vm1207_vm3, %v1201_v2, 0.0  ;;  %v1100_v48 = vsub.f32 1.0, %v1854_v17  ;;  %v1856_v33 = vpop.eup %1855 }
 0x239   :  { %v1198_v53 = vmul.f32 %v2277_v43, %v1174_v47  ;;  %v1102_v41 = vsub.f32 1.0, %v1856_v33 }
 0x23b   :  { %v1144_v56 = vpop.permute.xlu1 %1143  ;;  %v1221_v57 = vsel %vm1207_vm3, %v1198_v53, 0.0 }
 0x23c   :  { %v1222_v59 = vadd.f32 %v1221_v57, %v1220_v45  ;;  %v1179_v8 = vmul.f32 %v1144_v56, %v1099_v52 }
 0x23e   :  { %v1244_v35 = vmul.f32 %v1522_v32, %v1222_v59 }
 0x23f   :  { %v1138_v61 = vpop.permute.xlu1 %1137 }
 0x240   :  { %v1176_v28 = vmul.f32 %v1138_v61, %v1096_v14  ;;  %v1250_v45 = vadd.f32 %v1523_v36, %v1244_v35  ;;  %v1759_v14 = vld [vmem:[%s2326_s2 + $0x20] sm:$0xff]  }
 0x241   :  { %v1526_v61 = vld [vmem:[%s2327_s3 + $0x3] ss:$0 sm:$0xff] }
 0x242   :  { %v1200_v3 = vmul.f32 %v2227_v58, %v1176_v28  ;;  %v1203_v58 = vmul.f32 %v2248_v1, %v1179_v8  ;;  %v1524_v50 = vmul.f32 -1.442695, %v1250_v45 }
 0x243   :  { %v1148_v39 = vpop.permute.xlu1 %1147 }
 0x244   :  { %v1224_v4 = vsel %vm1207_vm3, %v1200_v3, 0.0  ;;  %v1230_v25 = vsel %vm1207_vm3, %v1203_v58, 0.0  ;;  %v1181_v26 = vmul.f32 %v1148_v39, %v1101_v19  ;;  %1857 = vpow2.f32 %v1524_v50 }
 0x245   :  { %v1225_v5 = vadd.f32 %v1224_v4, %v1223_v34 }
 0x246   :  { %v1205_v1 = vmul.f32 %v2263_v0, %v1181_v26 }
 0x247   :  { %v1227_v46 = vadd.f32 %v1226_v7, %v1225_v5  ;;  %v1142_v11 = vpop.permute.xlu1 %1141 }
 0x248   :  { %v1178_v13 = vmul.f32 %v1142_v11, %v1098_v9  ;;  %v1234_v38 = vsel %vm1207_vm3, %v1205_v1, 0.0 }
 0x24a   :  { %v1202_v16 = vmul.f32 %v2253_v22, %v1178_v13 }
 0x24c   :  { %v1228_v21 = vsel %vm1207_vm3, %v1202_v16, 0.0 }
 0x24d   :  { %v1229_v24 = vadd.f32 %v1228_v21, %v1227_v46 }
 0x24e   :  { %v1146_v29 = vpop.permute.xlu1 %1145 }
 0x24f   :  { %v1231_v27 = vadd.f32 %v1230_v25, %v1229_v24  ;;  %v1180_v31 = vmul.f32 %v1146_v29, %v1100_v48 }
 0x251   :  { %v1204_v22 = vmul.f32 %v2268_v20, %v1180_v31  ;;  %v1858_v55 = vpop.eup %1857 }
 0x252   :  { %v1258_v56 = vadd.f32 1.0, %v1858_v55 }
 0x253   :  { %v1232_v15 = vsel %vm1207_vm3, %v1204_v22, 0.0 }
 0x254   :  { %v1233_v37 = vadd.f32 %v1232_v15, %v1231_v27 }
 0x256   :  { %v1235_v42 = vadd.f32 %v1234_v38, %v1233_v37  ;;  %v1150_v44 = vpop.permute.xlu1 %1149 }
 0x257   :  { %v1182_v47 = vmul.f32 %v1150_v44, %v1102_v41 }
 0x259   :  { %v1206_v0 = vmul.f32 %v2277_v43, %v1182_v47  ;;  %v1758_v43 = vld [vmem:[%s2326_s2 + $0x28] sm:$0xff]   ;;  %s1898_s2 = smov [#allocation2]  }
 0x25a   :  { %1727 = vmatpush3.bf16.msra.mxu1 %v1758_v43  ;;  %s1462_s29 = sshll.u32 %s1898_s2, 4  ;;  %s1463_s29 = int_to_ptr.vmem [resolvable:$true] %s1462_s29 }
 0x25b   :  { %v1236_v20 = vsel %vm1207_vm3, %v1206_v0, 0.0  ;;  %1728 = vmatprep.subr.bf16.mxu1 %v1895_v10  ;;  %p1878_p1 = scmp.lt.s32.totalorder %s1463_s29, %s1463_s29 }
 0x25c   :  { %v1237_v51 = vadd.f32 %v1236_v20, %v1235_v42 }
 0x25e   :  { %v1245_v6 = vmul.f32 %v1522_v32, %v1237_v51  ;;  %1729 = vmatpush3.bf16.msra.mxu1 %v1759_v14 }
 0x25f   :  { %1730 = vmatprep.subr.bf16.mxu1 %v1895_v10  ;;  %v1530_v10 = vld [vmem:[%s2327_s3 + $0x4] ss:$0 sm:$0xff]  ;;  %s1873_s3 = scalar_lea.vmem %s1463_s29, 256 }
 0x260   :  { %v1251_v53 = vadd.f32 %v1523_v36, %v1245_v6  ;;  %p1874_p0 = scmp.ne.s32.totalorder %s1463_s29, %s1873_s3  ;;  %p1879_p2 = scmp.lt.s32.totalorder %s1873_s3, %s1873_s3 }
 0x262   :  { %v1525_v54 = vmul.f32 -1.442695, %v1251_v53  ;;  %1731 = vmatpush3.bf16.msra.mxu1 %v1760_v18  ;;  %p1880_p3 = por %p1879_p2, %p1878_p1 }
 0x264   :  { %1859 = vpow2.f32 %v1525_v54  ;;  %p1881_p4 = pnand %p1880_p3, %p1874_p0 }
 0x265   :  { %1861 = vrcp.f32 %v1258_v56 }
 0x271   :  { %v1860_v12 = vpop.eup %1859 }
 0x272   :  { %v1259_v30 = vadd.f32 1.0, %v1860_v12  ;;  %v1862_v57 = vpop.eup %1861 }
 0x274   :  { %1863 = vrcp.f32 %v1259_v30 }
 0x281   :  { %v1864_v59 = vpop.eup %1863 }
 0x282   :  { %v1269_v60 = vpack.c.bf16 %v1864_v59, %v1862_v57 }
 0x284   :  { %1713 = vmatmul.mubr.msk.bf16.vlgmr.msra.gmra.mxu0 %vm1207_vm3, %v1269_v60 }
 0x344   :  { %v1323_v62 = vpop.f32.mrf.mxu0 }
 0x345   :  { %v1324_v63 = vadd.f32 %v1526_v61, %v1323_v62 }
 0x346   :  { %v1714_v28 = vpop.f32.mrf.mxu0 }
 0x347   :  { %v1330_v40 = vmax.f32 %v1324_v63, 0.0 }
 0x348   :  { %v1326_v2 = vpop.f32.mrf.mxu0 }
 0x349   :  { %v1327_v3 = vadd.f32 %v1526_v61, %v1326_v2 }
 0x34a   :  { %v1715_v23 = vpop.f32.mrf.mxu0 }
 0x34b   :  { %v1331_v39 = vmax.f32 %v1327_v3, 0.0 }
 0x34d   :  { %v1349_v34 = vpack.c.bf16 %v1331_v39, %v1330_v40 }
 0x34f   :  { %1733 = vmatmul.mubr.bf16.vlgmr.msra.gmra.mxu1 %v1349_v34 }
 0x40f   :  { %v1436_v52 = vpop.f32.mrf.mxu1 }
 0x410   :  { %v1437_v4 = vadd.f32 %v1530_v10, %v1436_v52 }
 0x411   :  { %v1734_v5 = vpop.f32.mrf.mxu1 }
 0x412   :  { %v1539_v7 = vmul.f32 -1.442695, %v1437_v4 }
 0x413   :  { %v1439_v8 = vpop.f32.mrf.mxu1 }
 0x414   :  { %1865 = vpow2.f32 %v1539_v7  ;;  %v1440_v9 = vadd.f32 %v1530_v10, %v1439_v8 }
 0x415   :  { %v1735_v46 = vpop.f32.mrf.mxu1 }
 0x416   :  { %v1540_v11 = vmul.f32 -1.442695, %v1440_v9 }
 0x418   :  { %1867 = vpow2.f32 %v1540_v11 }
 0x421   :  { %v1866_v13 = vpop.eup %1865 }
 0x422   :  { %v1449_v49 = vadd.f32 1.0, %v1866_v13 }
 0x424   :  { %1869 = vrcp.f32 %v1449_v49 }
 0x425   :  { %v1868_v58 = vpop.eup %1867 }
 0x426   :  { %v1450_v16 = vadd.f32 1.0, %v1868_v58 }
 0x428   :  { %1871 = vrcp.f32 %v1450_v16 }
 0x431   :  { %v1870_v17 = vpop.eup %1869 }
 0x432   :  { %1455 = vst [vmem:[#allocation2] sm:$0xff] %v1870_v17 }
 0x435   :  { %v1872_v19 = vpop.eup %1871 }
 0x436   :  { %1456 = vst [vmem:[#allocation2 + $0x8] sm:$0xff] %v1872_v19 }
 0x437   :  { %1884 = shalt.err (!%p1881_p4)
}
 0x438   :  { %s1899_s30 = smov 128   ;;  %s1900_s5 = smov 8  }
 0x439   :  { %1468 = dma.vmem_to_hbm [thread:$0]  %s1463_s29, 256, %s2328_s4, [#allocation3], %s1899_s30, %s1899_s30, %s1900_s5  }
 0x43a   :  { %1893 = dma.done.wait [#allocation3], 256  }
 0x43b   :  { %1894 = vsyncadd [#allocation3], 4294967040 }
 0x43c   :  { %1472 = vsyncpa [#allocation3], 1 }

</bundles_post_ra>
